<compile_context>
chip_gen: v5e
topology: v5e:2x2
jax: 0.10.0
libtpu: 0.0.40
codegen_flags: <defaults>
</compile_context>

<pallas_src>
import jax
import jax.numpy as jnp
from jax import lax
from jax.experimental import pallas as pl
from jax.experimental.pallas import tpu as pltpu

LN_EPS = 1e-5


def _make_rnn_kernel(B, T, V, D, H, C):
    TB = T * B
    G = 4 * H

    def kernel(ids_ref, emb_ref, ln_ref, w_ih_ref, w_hh_ref, bias_ref,
               w_cls_ref, out_ref):
        # ---- fused embedding gather: ONE one-hot matmul (padding_idx=0 row is zero) ----
        ids = ids_ref[...]                                           # (T*B, 1) int32, time-major
        vocab_lane = lax.broadcasted_iota(jnp.int32, (TB, V), 1)
        onehot = (vocab_lane == ids).astype(jnp.float32)             # (T*B, V)
        x = jnp.dot(onehot, emb_ref[...],
                    preferred_element_type=jnp.float32)              # (T*B, D)

        # ---- LayerNorm(char_dim) (biased variance, matches PyTorch) ----
        gamma = ln_ref[0:1, :]
        beta = ln_ref[1:2, :]
        mean = jnp.mean(x, axis=-1, keepdims=True)
        var = jnp.mean((x - mean) ** 2, axis=-1, keepdims=True)
        xn = (x - mean) * lax.rsqrt(var + LN_EPS) * gamma + beta

        # TODO(synk): Dropout(p=0.3) is identity here (eval mode); training-mode RNG
        #             dropout is not implemented.

        # Input contribution to all gates for all timesteps, one matmul (time-major rows).
        # w_ih / bias (and w_hh) already carry the 0.5 pre-scale on the i/f/o gate lanes,
        # so the recurrence needs only ONE tanh per step (sigmoid(x) = 0.5*tanh(x/2)+0.5).
        gates_x = jnp.dot(xn.astype(jnp.bfloat16), w_ih_ref[...],
                          preferred_element_type=jnp.float32) + bias_ref[0:1, :]   # (T*B, 4H)

        w_hh = w_hh_ref[...]                                         # (H, 4H) bf16, pre-scaled
        lane = lax.broadcasted_iota(jnp.int32, (1, G), 1)
        is_g = jnp.logical_and(lane >= 2 * H, lane < 3 * H)          # g-gate lanes keep plain tanh

        h = jnp.zeros((B, H), jnp.float32)
        c = jnp.zeros((B, H), jnp.float32)

        # ---- fully unrolled LSTM recurrence (T is static) ----
        for t in range(T):
            gx = gates_x[t * B:(t + 1) * B, :]                       # static contiguous (B, 4H)
            gates = gx + jnp.dot(h.astype(jnp.bfloat16), w_hh,
                                 preferred_element_type=jnp.float32)
            tnh = jnp.tanh(gates)                                    # single full-width EUP pass
            act = jnp.where(is_g, tnh, 0.5 * tnh + 0.5)              # i/f/o lanes -> sigmoid
            i_g = act[:, 0 * H:1 * H]
            f_g = act[:, 1 * H:2 * H]
            g_g = act[:, 2 * H:3 * H]
            o_g = act[:, 3 * H:4 * H]
            c = f_g * c + i_g * g_g
            h = o_g * jnp.tanh(c)

        # ---- classifier on the final hidden state (== ht.squeeze()) ----
        # TODO(synk): (2, 8) logits store is a masked vst.msk; pad to a 128-lane multiple
        #             if num_class ever grows (lane-dense stores).
        out_ref[...] = jnp.dot(h.astype(jnp.bfloat16), w_cls_ref[...],
                               preferred_element_type=jnp.float32) + bias_ref[1:2, 0:C]

    return kernel


def rnn_model_forward(x_ids, params):
    """x_ids: (B, T) int32 token ids.  Returns logits (B, num_class) f32."""
    emb = params["embedding"]                                        # (V, D) f32
    V, D = emb.shape
    B, T = x_ids.shape
    H = params["w_hh"].shape[0]
    C = params["w_cls"].shape[1]
    G = 4 * H

    # --- kernel-layout packing (tiny wrapper-side ops, constant-folded under jit) ---
    ids_tm = jnp.transpose(x_ids.astype(jnp.int32)).reshape(T * B, 1)        # time-major ids
    ln_params = jnp.concatenate([params["gamma"], params["beta"]], axis=0)   # (2, D)
    # 0.5 pre-scale on i/f/o gate lanes -> single-tanh gate nonlinearity in the kernel.
    gate_scale = jnp.concatenate([jnp.full((1, H), 0.5, jnp.float32),
                                  jnp.full((1, H), 0.5, jnp.float32),
                                  jnp.ones((1, H), jnp.float32),
                                  jnp.full((1, H), 0.5, jnp.float32)], axis=1)  # (1, 4H)
    w_ih = (params["w_ih"].astype(jnp.float32) * gate_scale).astype(jnp.bfloat16)   # (D, 4H)
    w_hh = (params["w_hh"].astype(jnp.float32) * gate_scale).astype(jnp.bfloat16)   # (H, 4H)
    b_lstm = params["b"] * gate_scale                                                # (1, 4H) f32
    b_cls_pad = jnp.pad(params["b_cls"], ((0, 0), (0, G - C)))
    biases = jnp.concatenate([b_lstm, b_cls_pad], axis=0)                            # (2, 4H) f32
    w_cls = params["w_cls"].astype(jnp.bfloat16)                                     # (H, C)

    vmem = pl.BlockSpec(memory_space=pltpu.MemorySpace.VMEM)

    flops = (2 * T * B * V * D + 2 * T * B * D * G + 2 * T * B * H * G + 2 * B * H * C)
    transcendentals = T * B * (G + H) + T * B
    bytes_accessed = (ids_tm.size * 4 + emb.size * 4 + ln_params.size * 4
                      + w_ih.size * 2 + w_hh.size * 2 + biases.size * 4
                      + w_cls.size * 2 + B * C * 4)

    return pl.pallas_call(
        _make_rnn_kernel(B, T, V, D, H, C),
        out_shape=jax.ShapeDtypeStruct((B, C), jnp.float32),
        in_specs=[vmem] * 7,
        out_specs=vmem,
        cost_estimate=pl.CostEstimate(flops=flops,
                                      transcendentals=transcendentals,
                                      bytes_accessed=bytes_accessed),
        compiler_params=pltpu.CompilerParams(vmem_limit_bytes=32 * 1024 * 1024),
    )(ids_tm, emb, ln_params, w_ih, w_hh, biases, w_cls)


def init_params(key, vocab_size, char_dim, hidden_size, num_class):
    ks = jax.random.split(key, 8)
    scale = 0.1
    emb = scale * jax.random.normal(ks[0], (vocab_size, char_dim), jnp.float32)
    emb = emb.at[0].set(0.0)                                         # padding_idx=0
    gamma = jnp.ones((1, char_dim), jnp.float32) + 0.05 * jax.random.normal(ks[1], (1, char_dim))
    beta = 0.05 * jax.random.normal(ks[2], (1, char_dim), jnp.float32)
    # PyTorch LSTM weights W_ih (4H,D), W_hh (4H,H), b_ih+b_hh — stored transposed, bf16.
    w_ih = (scale * jax.random.normal(ks[3], (char_dim, 4 * hidden_size), jnp.float32)
            ).astype(jnp.bfloat16)                                   # (D, 4H)
    w_hh = (scale * jax.random.normal(ks[4], (hidden_size, 4 * hidden_size), jnp.float32)
            ).astype(jnp.bfloat16)                                   # (H, 4H)
    b = scale * jax.random.normal(ks[5], (1, 4 * hidden_size), jnp.float32)
    w_cls = (scale * jax.random.normal(ks[6], (hidden_size, num_class), jnp.float32)
             ).astype(jnp.bfloat16)                                  # (H, C)
    b_cls = scale * jax.random.normal(ks[7], (1, num_class), jnp.float32)
    return dict(embedding=emb, gamma=gamma, beta=beta,
                w_ih=w_ih, w_hh=w_hh, b=b, w_cls=w_cls, b_cls=b_cls)


def reference_forward(x_ids, params):
    """Pure-JAX f32 reference matching the PyTorch forward (eval mode)."""
    w_ih = params["w_ih"].astype(jnp.float32)
    w_hh = params["w_hh"].astype(jnp.float32)
    w_cls = params["w_cls"].astype(jnp.float32)
    x = jnp.take(params["embedding"], x_ids, axis=0)
    mean = jnp.mean(x, axis=-1, keepdims=True)
    var = jnp.mean((x - mean) ** 2, axis=-1, keepdims=True)
    xn = (x - mean) / jnp.sqrt(var + LN_EPS) * params["gamma"] + params["beta"]
    B, T, D = xn.shape
    H = w_hh.shape[0]
    h = jnp.zeros((B, H), jnp.float32)
    c = jnp.zeros((B, H), jnp.float32)
    for t in range(T):
        gates = xn[:, t, :] @ w_ih + h @ w_hh + params["b"]
        i = jax.nn.sigmoid(gates[:, 0 * H:1 * H])
        f = jax.nn.sigmoid(gates[:, 1 * H:2 * H])
        g = jnp.tanh(gates[:, 2 * H:3 * H])
        o = jax.nn.sigmoid(gates[:, 3 * H:4 * H])
        c = f * c + i * g
        h = o * jnp.tanh(c)
    return h @ w_cls + params["b_cls"]


if __name__ == "__main__":
    # build_vocab(): 'pad' + 8 chars + 'unk' -> len(vocab)=10; nn.Embedding(len(vocab)+1, ...) -> 11 rows
    VOCAB_ROWS = 11
    CHAR_DIM = 16        # char_dim
    SEQ_LEN = 8          # sentence_length
    HIDDEN = 32          # hidden_size
    NUM_CLASS = 8        # num_class
    BATCH = 2

    key = jax.random.PRNGKey(0)
    k_ids, k_params = jax.random.split(key)
    params = init_params(k_params, VOCAB_ROWS, CHAR_DIM, HIDDEN, NUM_CLASS)
    x_ids = jax.random.randint(k_ids, (BATCH, SEQ_LEN), 0, VOCAB_ROWS, dtype=jnp.int32)

    logits = rnn_model_forward(x_ids, params)
    logits = jax.block_until_ready(logits)

    ref = reference_forward(x_ids, params)
    assert logits.shape == (BATCH, NUM_CLASS)
    # bf16 MXU operands (f32 accumulation) -> slightly looser tolerance vs the f32 reference.
    assert jnp.allclose(logits, ref, rtol=2e-2, atol=2e-2)

    print("KERNEL_OK")
</pallas_src>

<mosaic_0001>
module attributes {stable_mosaic.version = 11 : i64} {
  func.func @kernel(%arg0: memref<16x1xi32, #tpu.memory_space<vmem>>, %arg1: memref<11x16xf32, #tpu.memory_space<vmem>>, %arg2: memref<2x16xf32, #tpu.memory_space<vmem>>, %arg3: memref<16x128xbf16, #tpu.memory_space<vmem>>, %arg4: memref<32x128xbf16, #tpu.memory_space<vmem>>, %arg5: memref<2x128xf32, #tpu.memory_space<vmem>>, %arg6: memref<32x8xbf16, #tpu.memory_space<vmem>>, %arg7: memref<2x8xf32, #tpu.memory_space<vmem>>) attributes {dimension_semantics = [], scalar_prefetch = 0 : i64, scratch_operands = 0 : i64, tpu.core_type = #tpu.core_type<tc>} {
    %c0 = arith.constant 0 : index
    %c0_0 = arith.constant 0 : index
    %0 = vector.load %arg0[%c0, %c0_0] : memref<16x1xi32, #tpu.memory_space<vmem>>, vector<16x1xi32>
    %1 = tpu.iota {dimensions = array<i32: 1>} : vector<16x11xi32>
    %2 = vector.broadcast %0 : vector<16x1xi32> to vector<16x11xi32>
    %3 = arith.cmpi eq, %1, %2 : vector<16x11xi32>
    %4 = arith.extui %3 : vector<16x11xi1> to vector<16x11xi32>
    %5 = arith.sitofp %4 : vector<16x11xi32> to vector<16x11xf32>
    %c0_1 = arith.constant 0 : index
    %c0_2 = arith.constant 0 : index
    %6 = vector.load %arg1[%c0_1, %c0_2] : memref<11x16xf32, #tpu.memory_space<vmem>>, vector<11x16xf32>
    %cst = arith.constant dense<0.000000e+00> : vector<16x16xf32>
    %7 = tpu.matmul %5, %6, %cst {dimension_numbers = #tpu.dot_dimension_numbers<[1], [0], [0], [1], [0, 0, 1, 1], [], []>} : vector<16x11xf32>, vector<11x16xf32>, vector<16x16xf32> -> vector<16x16xf32>
    %c0_3 = arith.constant 0 : index
    %c0_4 = arith.constant 0 : index
    %8 = vector.load %arg2[%c0_3, %c0_4] : memref<2x16xf32, #tpu.memory_space<vmem>>, vector<1x16xf32>
    %c1 = arith.constant 1 : index
    %c0_5 = arith.constant 0 : index
    %9 = vector.load %arg2[%c1, %c0_5] : memref<2x16xf32, #tpu.memory_space<vmem>>, vector<1x16xf32>
    %cst_6 = arith.constant dense<0.000000e+00> : vector<16xf32>
    %10 = vector.multi_reduction <add>, %7, %cst_6 [1] : vector<16x16xf32> to vector<16xf32>
    %11 = vector.shape_cast %10 : vector<16xf32> to vector<16x1xf32>
    %cst_7 = arith.constant 1.600000e+01 : f32
    %12 = vector.broadcast %cst_7 : f32 to vector<16x1xf32>
    %13 = arith.divf %11, %12 : vector<16x1xf32>
    %14 = vector.broadcast %13 : vector<16x1xf32> to vector<16x16xf32>
    %15 = arith.subf %7, %14 : vector<16x16xf32>
    %16 = arith.mulf %15, %15 : vector<16x16xf32>
    %cst_8 = arith.constant dense<0.000000e+00> : vector<16xf32>
    %17 = vector.multi_reduction <add>, %16, %cst_8 [1] : vector<16x16xf32> to vector<16xf32>
    %18 = vector.shape_cast %17 : vector<16xf32> to vector<16x1xf32>
    %cst_9 = arith.constant 1.600000e+01 : f32
    %19 = vector.broadcast %cst_9 : f32 to vector<16x1xf32>
    %20 = arith.divf %18, %19 : vector<16x1xf32>
    %21 = vector.broadcast %13 : vector<16x1xf32> to vector<16x16xf32>
    %22 = arith.subf %7, %21 : vector<16x16xf32>
    %cst_10 = arith.constant 9.99999974E-6 : f32
    %23 = vector.broadcast %cst_10 : f32 to vector<16x1xf32>
    %24 = arith.addf %20, %23 : vector<16x1xf32>
    %25 = math.rsqrt %24 : vector<16x1xf32>
    %26 = vector.broadcast %25 : vector<16x1xf32> to vector<16x16xf32>
    %27 = arith.mulf %22, %26 : vector<16x16xf32>
    %28 = vector.broadcast %8 : vector<1x16xf32> to vector<16x16xf32>
    %29 = arith.mulf %27, %28 : vector<16x16xf32>
    %30 = vector.broadcast %9 : vector<1x16xf32> to vector<16x16xf32>
    %31 = arith.addf %29, %30 : vector<16x16xf32>
    %32 = arith.truncf %31 : vector<16x16xf32> to vector<16x16xbf16>
    %c0_11 = arith.constant 0 : index
    %c0_12 = arith.constant 0 : index
    %33 = vector.load %arg3[%c0_11, %c0_12] : memref<16x128xbf16, #tpu.memory_space<vmem>>, vector<16x128xbf16>
    %cst_13 = arith.constant dense<0.000000e+00> : vector<16x128xf32>
    %34 = tpu.matmul %32, %33, %cst_13 {dimension_numbers = #tpu.dot_dimension_numbers<[1], [0], [0], [1], [0, 0, 1, 1], [], []>} : vector<16x16xbf16>, vector<16x128xbf16>, vector<16x128xf32> -> vector<16x128xf32>
    %c0_14 = arith.constant 0 : index
    %c0_15 = arith.constant 0 : index
    %35 = vector.load %arg5[%c0_14, %c0_15] : memref<2x128xf32, #tpu.memory_space<vmem>>, vector<1x128xf32>
    %36 = vector.broadcast %35 : vector<1x128xf32> to vector<16x128xf32>
    %37 = arith.addf %34, %36 : vector<16x128xf32>
    %c0_16 = arith.constant 0 : index
    %c0_17 = arith.constant 0 : index
    %38 = vector.load %arg4[%c0_16, %c0_17] : memref<32x128xbf16, #tpu.memory_space<vmem>>, vector<32x128xbf16>
    %39 = tpu.iota {dimensions = array<i32: 1>} : vector<1x128xi32>
    %c64_i32 = arith.constant 64 : i32
    %40 = vector.broadcast %c64_i32 : i32 to vector<1x128xi32>
    %41 = arith.cmpi sge, %39, %40 : vector<1x128xi32>
    %c96_i32 = arith.constant 96 : i32
    %42 = vector.broadcast %c96_i32 : i32 to vector<1x128xi32>
    %43 = arith.cmpi slt, %39, %42 : vector<1x128xi32>
    %44 = arith.andi %41, %43 : vector<1x128xi1>
    %cst_18 = arith.constant 0.000000e+00 : f32
    %45 = vector.broadcast %cst_18 : f32 to vector<2x32xf32>
    %cst_19 = arith.constant 0.000000e+00 : f32
    %46 = vector.broadcast %cst_19 : f32 to vector<2x32xf32>
    %47 = vector.extract_strided_slice %37 {offsets = [0, 0], sizes = [2, 128], strides = [1, 1]} : vector<16x128xf32> to vector<2x128xf32>
    %48 = arith.truncf %45 : vector<2x32xf32> to vector<2x32xbf16>
    %cst_20 = arith.constant dense<0.000000e+00> : vector<2x128xf32>
    %49 = tpu.matmul %48, %38, %cst_20 {dimension_numbers = #tpu.dot_dimension_numbers<[1], [0], [0], [1], [0, 0, 1, 1], [], []>} : vector<2x32xbf16>, vector<32x128xbf16>, vector<2x128xf32> -> vector<2x128xf32>
    %50 = arith.addf %47, %49 : vector<2x128xf32>
    %51 = math.tanh %50 : vector<2x128xf32>
    %cst_21 = arith.constant 5.000000e-01 : f32
    %52 = vector.broadcast %cst_21 : f32 to vector<2x128xf32>
    %53 = arith.mulf %52, %51 : vector<2x128xf32>
    %cst_22 = arith.constant 5.000000e-01 : f32
    %54 = vector.broadcast %cst_22 : f32 to vector<2x128xf32>
    %55 = arith.addf %53, %54 : vector<2x128xf32>
    %56 = vector.shape_cast %44 : vector<1x128xi1> to vector<1x128xi1>
    %57 = vector.broadcast %56 : vector<1x128xi1> to vector<2x128xi1>
    %58 = arith.select %57, %51, %55 : vector<2x128xi1>, vector<2x128xf32>
    %59 = vector.extract_strided_slice %58 {offsets = [0, 0], sizes = [2, 32], strides = [1, 1]} : vector<2x128xf32> to vector<2x32xf32>
    %60 = vector.extract_strided_slice %58 {offsets = [0, 32], sizes = [2, 32], strides = [1, 1]} : vector<2x128xf32> to vector<2x32xf32>
    %61 = vector.extract_strided_slice %58 {offsets = [0, 64], sizes = [2, 32], strides = [1, 1]} : vector<2x128xf32> to vector<2x32xf32>
    %62 = vector.extract_strided_slice %58 {offsets = [0, 96], sizes = [2, 32], strides = [1, 1]} : vector<2x128xf32> to vector<2x32xf32>
    %63 = arith.mulf %60, %46 : vector<2x32xf32>
    %64 = arith.mulf %59, %61 : vector<2x32xf32>
    %65 = arith.addf %63, %64 : vector<2x32xf32>
    %66 = math.tanh %65 : vector<2x32xf32>
    %67 = arith.mulf %62, %66 : vector<2x32xf32>
    %68 = vector.extract_strided_slice %37 {offsets = [2, 0], sizes = [2, 128], strides = [1, 1]} : vector<16x128xf32> to vector<2x128xf32>
    %69 = arith.truncf %67 : vector<2x32xf32> to vector<2x32xbf16>
    %cst_23 = arith.constant dense<0.000000e+00> : vector<2x128xf32>
    %70 = tpu.matmul %69, %38, %cst_23 {dimension_numbers = #tpu.dot_dimension_numbers<[1], [0], [0], [1], [0, 0, 1, 1], [], []>} : vector<2x32xbf16>, vector<32x128xbf16>, vector<2x128xf32> -> vector<2x128xf32>
    %71 = arith.addf %68, %70 : vector<2x128xf32>
    %72 = math.tanh %71 : vector<2x128xf32>
    %cst_24 = arith.constant 5.000000e-01 : f32
    %73 = vector.broadcast %cst_24 : f32 to vector<2x128xf32>
    %74 = arith.mulf %73, %72 : vector<2x128xf32>
    %cst_25 = arith.constant 5.000000e-01 : f32
    %75 = vector.broadcast %cst_25 : f32 to vector<2x128xf32>
    %76 = arith.addf %74, %75 : vector<2x128xf32>
    %77 = vector.shape_cast %44 : vector<1x128xi1> to vector<1x128xi1>
    %78 = vector.broadcast %77 : vector<1x128xi1> to vector<2x128xi1>
    %79 = arith.select %78, %72, %76 : vector<2x128xi1>, vector<2x128xf32>
    %80 = vector.extract_strided_slice %79 {offsets = [0, 0], sizes = [2, 32], strides = [1, 1]} : vector<2x128xf32> to vector<2x32xf32>
    %81 = vector.extract_strided_slice %79 {offsets = [0, 32], sizes = [2, 32], strides = [1, 1]} : vector<2x128xf32> to vector<2x32xf32>
    %82 = vector.extract_strided_slice %79 {offsets = [0, 64], sizes = [2, 32], strides = [1, 1]} : vector<2x128xf32> to vector<2x32xf32>
    %83 = vector.extract_strided_slice %79 {offsets = [0, 96], sizes = [2, 32], strides = [1, 1]} : vector<2x128xf32> to vector<2x32xf32>
    %84 = arith.mulf %81, %65 : vector<2x32xf32>
    %85 = arith.mulf %80, %82 : vector<2x32xf32>
    %86 = arith.addf %84, %85 : vector<2x32xf32>
    %87 = math.tanh %86 : vector<2x32xf32>
    %88 = arith.mulf %83, %87 : vector<2x32xf32>
    %89 = vector.extract_strided_slice %37 {offsets = [4, 0], sizes = [2, 128], strides = [1, 1]} : vector<16x128xf32> to vector<2x128xf32>
    %90 = arith.truncf %88 : vector<2x32xf32> to vector<2x32xbf16>
    %cst_26 = arith.constant dense<0.000000e+00> : vector<2x128xf32>
    %91 = tpu.matmul %90, %38, %cst_26 {dimension_numbers = #tpu.dot_dimension_numbers<[1], [0], [0], [1], [0, 0, 1, 1], [], []>} : vector<2x32xbf16>, vector<32x128xbf16>, vector<2x128xf32> -> vector<2x128xf32>
    %92 = arith.addf %89, %91 : vector<2x128xf32>
    %93 = math.tanh %92 : vector<2x128xf32>
    %cst_27 = arith.constant 5.000000e-01 : f32
    %94 = vector.broadcast %cst_27 : f32 to vector<2x128xf32>
    %95 = arith.mulf %94, %93 : vector<2x128xf32>
    %cst_28 = arith.constant 5.000000e-01 : f32
    %96 = vector.broadcast %cst_28 : f32 to vector<2x128xf32>
    %97 = arith.addf %95, %96 : vector<2x128xf32>
    %98 = vector.shape_cast %44 : vector<1x128xi1> to vector<1x128xi1>
    %99 = vector.broadcast %98 : vector<1x128xi1> to vector<2x128xi1>
    %100 = arith.select %99, %93, %97 : vector<2x128xi1>, vector<2x128xf32>
    %101 = vector.extract_strided_slice %100 {offsets = [0, 0], sizes = [2, 32], strides = [1, 1]} : vector<2x128xf32> to vector<2x32xf32>
    %102 = vector.extract_strided_slice %100 {offsets = [0, 32], sizes = [2, 32], strides = [1, 1]} : vector<2x128xf32> to vector<2x32xf32>
    %103 = vector.extract_strided_slice %100 {offsets = [0, 64], sizes = [2, 32], strides = [1, 1]} : vector<2x128xf32> to vector<2x32xf32>
    %104 = vector.extract_strided_slice %100 {offsets = [0, 96], sizes = [2, 32], strides = [1, 1]} : vector<2x128xf32> to vector<2x32xf32>
    %105 = arith.mulf %102, %86 : vector<2x32xf32>
    %106 = arith.mulf %101, %103 : vector<2x32xf32>
    %107 = arith.addf %105, %106 : vector<2x32xf32>
    %108 = math.tanh %107 : vector<2x32xf32>
    %109 = arith.mulf %104, %108 : vector<2x32xf32>
    %110 = vector.extract_strided_slice %37 {offsets = [6, 0], sizes = [2, 128], strides = [1, 1]} : vector<16x128xf32> to vector<2x128xf32>
    %111 = arith.truncf %109 : vector<2x32xf32> to vector<2x32xbf16>
    %cst_29 = arith.constant dense<0.000000e+00> : vector<2x128xf32>
    %112 = tpu.matmul %111, %38, %cst_29 {dimension_numbers = #tpu.dot_dimension_numbers<[1], [0], [0], [1], [0, 0, 1, 1], [], []>} : vector<2x32xbf16>, vector<32x128xbf16>, vector<2x128xf32> -> vector<2x128xf32>
    %113 = arith.addf %110, %112 : vector<2x128xf32>
    %114 = math.tanh %113 : vector<2x128xf32>
    %cst_30 = arith.constant 5.000000e-01 : f32
    %115 = vector.broadcast %cst_30 : f32 to vector<2x128xf32>
    %116 = arith.mulf %115, %114 : vector<2x128xf32>
    %cst_31 = arith.constant 5.000000e-01 : f32
    %117 = vector.broadcast %cst_31 : f32 to vector<2x128xf32>
    %118 = arith.addf %116, %117 : vector<2x128xf32>
    %119 = vector.shape_cast %44 : vector<1x128xi1> to vector<1x128xi1>
    %120 = vector.broadcast %119 : vector<1x128xi1> to vector<2x128xi1>
    %121 = arith.select %120, %114, %118 : vector<2x128xi1>, vector<2x128xf32>
    %122 = vector.extract_strided_slice %121 {offsets = [0, 0], sizes = [2, 32], strides = [1, 1]} : vector<2x128xf32> to vector<2x32xf32>
    %123 = vector.extract_strided_slice %121 {offsets = [0, 32], sizes = [2, 32], strides = [1, 1]} : vector<2x128xf32> to vector<2x32xf32>
    %124 = vector.extract_strided_slice %121 {offsets = [0, 64], sizes = [2, 32], strides = [1, 1]} : vector<2x128xf32> to vector<2x32xf32>
    %125 = vector.extract_strided_slice %121 {offsets = [0, 96], sizes = [2, 32], strides = [1, 1]} : vector<2x128xf32> to vector<2x32xf32>
    %126 = arith.mulf %123, %107 : vector<2x32xf32>
    %127 = arith.mulf %122, %124 : vector<2x32xf32>
    %128 = arith.addf %126, %127 : vector<2x32xf32>
    %129 = math.tanh %128 : vector<2x32xf32>
    %130 = arith.mulf %125, %129 : vector<2x32xf32>
    %131 = vector.extract_strided_slice %37 {offsets = [8, 0], sizes = [2, 128], strides = [1, 1]} : vector<16x128xf32> to vector<2x128xf32>
    %132 = arith.truncf %130 : vector<2x32xf32> to vector<2x32xbf16>
    %cst_32 = arith.constant dense<0.000000e+00> : vector<2x128xf32>
    %133 = tpu.matmul %132, %38, %cst_32 {dimension_numbers = #tpu.dot_dimension_numbers<[1], [0], [0], [1], [0, 0, 1, 1], [], []>} : vector<2x32xbf16>, vector<32x128xbf16>, vector<2x128xf32> -> vector<2x128xf32>
    %134 = arith.addf %131, %133 : vector<2x128xf32>
    %135 = math.tanh %134 : vector<2x128xf32>
    %cst_33 = arith.constant 5.000000e-01 : f32
    %136 = vector.broadcast %cst_33 : f32 to vector<2x128xf32>
    %137 = arith.mulf %136, %135 : vector<2x128xf32>
    %cst_34 = arith.constant 5.000000e-01 : f32
    %138 = vector.broadcast %cst_34 : f32 to vector<2x128xf32>
    %139 = arith.addf %137, %138 : vector<2x128xf32>
    %140 = vector.shape_cast %44 : vector<1x128xi1> to vector<1x128xi1>
    %141 = vector.broadcast %140 : vector<1x128xi1> to vector<2x128xi1>
    %142 = arith.select %141, %135, %139 : vector<2x128xi1>, vector<2x128xf32>
    %143 = vector.extract_strided_slice %142 {offsets = [0, 0], sizes = [2, 32], strides = [1, 1]} : vector<2x128xf32> to vector<2x32xf32>
    %144 = vector.extract_strided_slice %142 {offsets = [0, 32], sizes = [2, 32], strides = [1, 1]} : vector<2x128xf32> to vector<2x32xf32>
    %145 = vector.extract_strided_slice %142 {offsets = [0, 64], sizes = [2, 32], strides = [1, 1]} : vector<2x128xf32> to vector<2x32xf32>
    %146 = vector.extract_strided_slice %142 {offsets = [0, 96], sizes = [2, 32], strides = [1, 1]} : vector<2x128xf32> to vector<2x32xf32>
    %147 = arith.mulf %144, %128 : vector<2x32xf32>
    %148 = arith.mulf %143, %145 : vector<2x32xf32>
    %149 = arith.addf %147, %148 : vector<2x32xf32>
    %150 = math.tanh %149 : vector<2x32xf32>
    %151 = arith.mulf %146, %150 : vector<2x32xf32>
    %152 = vector.extract_strided_slice %37 {offsets = [10, 0], sizes = [2, 128], strides = [1, 1]} : vector<16x128xf32> to vector<2x128xf32>
    %153 = arith.truncf %151 : vector<2x32xf32> to vector<2x32xbf16>
    %cst_35 = arith.constant dense<0.000000e+00> : vector<2x128xf32>
    %154 = tpu.matmul %153, %38, %cst_35 {dimension_numbers = #tpu.dot_dimension_numbers<[1], [0], [0], [1], [0, 0, 1, 1], [], []>} : vector<2x32xbf16>, vector<32x128xbf16>, vector<2x128xf32> -> vector<2x128xf32>
    %155 = arith.addf %152, %154 : vector<2x128xf32>
    %156 = math.tanh %155 : vector<2x128xf32>
    %cst_36 = arith.constant 5.000000e-01 : f32
    %157 = vector.broadcast %cst_36 : f32 to vector<2x128xf32>
    %158 = arith.mulf %157, %156 : vector<2x128xf32>
    %cst_37 = arith.constant 5.000000e-01 : f32
    %159 = vector.broadcast %cst_37 : f32 to vector<2x128xf32>
    %160 = arith.addf %158, %159 : vector<2x128xf32>
    %161 = vector.shape_cast %44 : vector<1x128xi1> to vector<1x128xi1>
    %162 = vector.broadcast %161 : vector<1x128xi1> to vector<2x128xi1>
    %163 = arith.select %162, %156, %160 : vector<2x128xi1>, vector<2x128xf32>
    %164 = vector.extract_strided_slice %163 {offsets = [0, 0], sizes = [2, 32], strides = [1, 1]} : vector<2x128xf32> to vector<2x32xf32>
    %165 = vector.extract_strided_slice %163 {offsets = [0, 32], sizes = [2, 32], strides = [1, 1]} : vector<2x128xf32> to vector<2x32xf32>
    %166 = vector.extract_strided_slice %163 {offsets = [0, 64], sizes = [2, 32], strides = [1, 1]} : vector<2x128xf32> to vector<2x32xf32>
    %167 = vector.extract_strided_slice %163 {offsets = [0, 96], sizes = [2, 32], strides = [1, 1]} : vector<2x128xf32> to vector<2x32xf32>
    %168 = arith.mulf %165, %149 : vector<2x32xf32>
    %169 = arith.mulf %164, %166 : vector<2x32xf32>
    %170 = arith.addf %168, %169 : vector<2x32xf32>
    %171 = math.tanh %170 : vector<2x32xf32>
    %172 = arith.mulf %167, %171 : vector<2x32xf32>
    %173 = vector.extract_strided_slice %37 {offsets = [12, 0], sizes = [2, 128], strides = [1, 1]} : vector<16x128xf32> to vector<2x128xf32>
    %174 = arith.truncf %172 : vector<2x32xf32> to vector<2x32xbf16>
    %cst_38 = arith.constant dense<0.000000e+00> : vector<2x128xf32>
    %175 = tpu.matmul %174, %38, %cst_38 {dimension_numbers = #tpu.dot_dimension_numbers<[1], [0], [0], [1], [0, 0, 1, 1], [], []>} : vector<2x32xbf16>, vector<32x128xbf16>, vector<2x128xf32> -> vector<2x128xf32>
    %176 = arith.addf %173, %175 : vector<2x128xf32>
    %177 = math.tanh %176 : vector<2x128xf32>
    %cst_39 = arith.constant 5.000000e-01 : f32
    %178 = vector.broadcast %cst_39 : f32 to vector<2x128xf32>
    %179 = arith.mulf %178, %177 : vector<2x128xf32>
    %cst_40 = arith.constant 5.000000e-01 : f32
    %180 = vector.broadcast %cst_40 : f32 to vector<2x128xf32>
    %181 = arith.addf %179, %180 : vector<2x128xf32>
    %182 = vector.shape_cast %44 : vector<1x128xi1> to vector<1x128xi1>
    %183 = vector.broadcast %182 : vector<1x128xi1> to vector<2x128xi1>
    %184 = arith.select %183, %177, %181 : vector<2x128xi1>, vector<2x128xf32>
    %185 = vector.extract_strided_slice %184 {offsets = [0, 0], sizes = [2, 32], strides = [1, 1]} : vector<2x128xf32> to vector<2x32xf32>
    %186 = vector.extract_strided_slice %184 {offsets = [0, 32], sizes = [2, 32], strides = [1, 1]} : vector<2x128xf32> to vector<2x32xf32>
    %187 = vector.extract_strided_slice %184 {offsets = [0, 64], sizes = [2, 32], strides = [1, 1]} : vector<2x128xf32> to vector<2x32xf32>
    %188 = vector.extract_strided_slice %184 {offsets = [0, 96], sizes = [2, 32], strides = [1, 1]} : vector<2x128xf32> to vector<2x32xf32>
    %189 = arith.mulf %186, %170 : vector<2x32xf32>
    %190 = arith.mulf %185, %187 : vector<2x32xf32>
    %191 = arith.addf %189, %190 : vector<2x32xf32>
    %192 = math.tanh %191 : vector<2x32xf32>
    %193 = arith.mulf %188, %192 : vector<2x32xf32>
    %194 = vector.extract_strided_slice %37 {offsets = [14, 0], sizes = [2, 128], strides = [1, 1]} : vector<16x128xf32> to vector<2x128xf32>
    %195 = arith.truncf %193 : vector<2x32xf32> to vector<2x32xbf16>
    %cst_41 = arith.constant dense<0.000000e+00> : vector<2x128xf32>
    %196 = tpu.matmul %195, %38, %cst_41 {dimension_numbers = #tpu.dot_dimension_numbers<[1], [0], [0], [1], [0, 0, 1, 1], [], []>} : vector<2x32xbf16>, vector<32x128xbf16>, vector<2x128xf32> -> vector<2x128xf32>
    %197 = arith.addf %194, %196 : vector<2x128xf32>
    %198 = math.tanh %197 : vector<2x128xf32>
    %cst_42 = arith.constant 5.000000e-01 : f32
    %199 = vector.broadcast %cst_42 : f32 to vector<2x128xf32>
    %200 = arith.mulf %199, %198 : vector<2x128xf32>
    %cst_43 = arith.constant 5.000000e-01 : f32
    %201 = vector.broadcast %cst_43 : f32 to vector<2x128xf32>
    %202 = arith.addf %200, %201 : vector<2x128xf32>
    %203 = vector.shape_cast %44 : vector<1x128xi1> to vector<1x128xi1>
    %204 = vector.broadcast %203 : vector<1x128xi1> to vector<2x128xi1>
    %205 = arith.select %204, %198, %202 : vector<2x128xi1>, vector<2x128xf32>
    %206 = vector.extract_strided_slice %205 {offsets = [0, 0], sizes = [2, 32], strides = [1, 1]} : vector<2x128xf32> to vector<2x32xf32>
    %207 = vector.extract_strided_slice %205 {offsets = [0, 32], sizes = [2, 32], strides = [1, 1]} : vector<2x128xf32> to vector<2x32xf32>
    %208 = vector.extract_strided_slice %205 {offsets = [0, 64], sizes = [2, 32], strides = [1, 1]} : vector<2x128xf32> to vector<2x32xf32>
    %209 = vector.extract_strided_slice %205 {offsets = [0, 96], sizes = [2, 32], strides = [1, 1]} : vector<2x128xf32> to vector<2x32xf32>
    %210 = arith.mulf %207, %191 : vector<2x32xf32>
    %211 = arith.mulf %206, %208 : vector<2x32xf32>
    %212 = arith.addf %210, %211 : vector<2x32xf32>
    %213 = math.tanh %212 : vector<2x32xf32>
    %214 = arith.mulf %209, %213 : vector<2x32xf32>
    %215 = arith.truncf %214 : vector<2x32xf32> to vector<2x32xbf16>
    %c0_44 = arith.constant 0 : index
    %c0_45 = arith.constant 0 : index
    %216 = vector.load %arg6[%c0_44, %c0_45] : memref<32x8xbf16, #tpu.memory_space<vmem>>, vector<32x8xbf16>
    %cst_46 = arith.constant dense<0.000000e+00> : vector<2x8xf32>
    %217 = tpu.matmul %215, %216, %cst_46 {dimension_numbers = #tpu.dot_dimension_numbers<[1], [0], [0], [1], [0, 0, 1, 1], [], []>} : vector<2x32xbf16>, vector<32x8xbf16>, vector<2x8xf32> -> vector<2x8xf32>
    %c1_47 = arith.constant 1 : index
    %c0_48 = arith.constant 0 : index
    %218 = vector.load %arg5[%c1_47, %c0_48] : memref<2x128xf32, #tpu.memory_space<vmem>>, vector<1x8xf32>
    %219 = vector.broadcast %218 : vector<1x8xf32> to vector<2x8xf32>
    %220 = arith.addf %217, %219 : vector<2x8xf32>
    %c0_49 = arith.constant 0 : index
    %c0_50 = arith.constant 0 : index
    %221 = vector.load %arg7[%c0_49, %c0_50] : memref<2x8xf32, #tpu.memory_space<vmem>>, vector<2x8xf32>
    tpu.vector_store %arg7[%c0_49, %c0_50], %220 {strides = array<i32>} : memref<2x8xf32, #tpu.memory_space<vmem>>, vector<2x8xf32>,
    return
  }
}

</mosaic_0001>

<bundles_post_ra>
// kernel: tpu_custom_call.1
= control target key start
LH: loop header
LB: loop body
LE: loop exit
PB: predicated region body
PF: predicated region fallthrough
CT: control target
= control target key end

     0   :  { %12 = vsyncpa [#allocation3], 0  ;;  %s961_s0 = inlined_call_operand.vmem [shape: s32[16,1], index: 0, kind: input, shape index: {}]   ;;  %s962_s1 = inlined_call_operand.vmem [shape: f32[11,16], index: 1, kind: input, shape index: {}]   ;;  %s963_s2 = inlined_call_operand.vmem [shape: f32[2,16], index: 2, kind: input, shape index: {}]   ;;  %s964_s3 = inlined_call_operand.hbm [shape: bf16[16,128], index: 3, kind: input, shape index: {}]   ;;  %s965_s4 = inlined_call_operand.vmem [shape: bf16[32,128], index: 4, kind: input, shape index: {}]   ;;  %s966_s5 = inlined_call_operand.vmem [shape: f32[2,128], index: 5, kind: input, shape index: {}]   ;;  %s967_s6 = inlined_call_operand.vmem [shape: bf16[32,8], index: 6, kind: input, shape index: {}]   ;;  %s968_s7 = inlined_call_operand.hbm [shape: f32[2,8], index: 7, kind: output, shape index: {}]  }
   0x1   :  { %13 = vsyncpa [#allocation4], 0  ;;  %s24_s26 = sshll.u32 %s964_s3, 4  ;;  %s782_s27 = smov [#allocation2]   ;;  %s25_s26 = int_to_ptr.hbm [resolvable:$true] %s24_s26 }
   0x2   :  { %s26_s28 = sshll.u32 %s782_s27, 4  ;;  %s783_s29 = smov 64   ;;  %s27_s28 = int_to_ptr.vmem [resolvable:$true] %s26_s28 }
   0x3   :  { %s784_s30 = smov 4  }
   0x4   :  { %32 = dma.hbm_to_vmem [thread:$0]  %s25_s26, 128, %s27_s28, [#allocation3], %s783_s29, %s783_s29, %s784_s30  }
   0x5   :  { %778 = dma.done.wait [#allocation3], 128  }
   0x6   :  { %779 = vsyncadd [#allocation3], 4294967168  ;;  %v785_v0 = vmov 0   ;;  %vm69_vm0 = vcmask 1042432   ;;  %v44_v1 = vld [vmem:[%s961_s0] sm:$0xff]  ;;  %v45_v3 = vld [vmem:[%s961_s0 + $0x8] sm:$0xff]  ;;  %v46_v5 = vlaneseq }
   0x7   :  { %687 = vset.pattern.permute.xlu0 %v785_v0  ;;  %v61_v2 = vld [vmem:[%s962_s1 + $0x8] sm:$0x7]  ;;  %v60_v4 = vld [vmem:[%s962_s1] sm:$0xff]  ;;  %vm62_vm1 = vcmask 89088   ;;  %v786_v8 = vmov 0.0   ;;  %vm98_vm4 = vcmask 130048  }
   0x8   :  { %49 = vperm.xlu0 %687, %v44_v1   ;;  %642 = vmatpush.msk.msra.mxu0 %vm69_vm0, %v61_v2  ;;  %v847_v6 = vand.u32 127, %v46_v5  ;;  %v787_v16 = vmov 16.0   ;;  %v676_v33 = vld [vmem:[%s965_s4 + $0x8] sm:$0xff]  ;;  %v675_v34 = vld [vmem:[%s965_s4] sm:$0xff]  ;;  %vm203_vm15 = vcmask 261120   ;;  %s789_s28 = smov [#allocation5]  }
   0x9   :  { %692 = vrcp.f32 %v787_v16  ;;  %213 = vmatpush.bf16.msra.mxu2 %v676_v33  ;;  %257 = vmatpush.bf16.msra.mxu3 %v676_v33  ;;  %v674_v35 = vld [vmem:[#allocation2] sm:$0xff]  ;;  %v688_v55 = vld [vmem:[%s963_s2] ss:$0 sm:$0xff]  ;;  %v689_v60 = vld [vmem:[%s963_s2 + $0x1] ss:$0 sm:$0xff]  ;;  %s788_s2 = smov 32  }
   0xa   :  { %88 = vmatpush.msra.mxu0 %v60_v4  ;;  %177 = vmatpush.bf16.msra.mxu1 %v674_v35  ;;  %vm188_vm12 = vcmp.ge.s32.totalorder %v847_v6, 64  ;;  %vm189_vm13 = vcmp.lt.s32.totalorder %v847_v6, 96  ;;  %vm621_vm0 = vcmask 58368  }
   0xb   :  { %vm879_vm14 = vmand %vm188_vm12, %vm189_vm13 }
   0xc   :  { %306 = vmatpush.bf16.msrb.mxu0 %v676_v33 }
   0xd   :  { %214 = vmatpush.bf16.msra.mxu2 %v675_v34  ;;  %258 = vmatpush.bf16.msra.mxu3 %v675_v34 }
   0xe   :  { %355 = vmatpush.bf16.msrb.mxu1 %v676_v33 }
   0xf   :  { %v693_v17 = vpop.eup %692 }
  0x10   :  { %52 = vperm.xlu0 %687, %v45_v3   ;;  %v106_v18 = vmul.f32 16.0, %v693_v17  ;;  %vm110_vm5 = vweird.f32 %v693_v17  ;;  %307 = vmatpush.bf16.msrb.mxu0 %v675_v34  ;;  %v871_v3 = vld [vmem:[%s966_s5] ss:$0 sm:$0xff] }
  0x11   :  { %404 = vmatpush.bf16.msrb.mxu2 %v676_v33  ;;  %449 = vmatpush.bf16.msrb.mxu3 %v676_v33 }
  0x12   :  { %v107_v19 = vsub.f32 1.0, %v106_v18  ;;  %215 = vmatmul.bf16.vlgmr.msra.gmra.mxu2 %v785_v0  ;;  %356 = vmatpush.bf16.msrb.mxu1 %v675_v34 }
  0x14   :  { %v108_v20 = vmul.f32 %v693_v17, %v107_v19 }
  0x15   :  { %405 = vmatpush.bf16.msrb.mxu2 %v675_v34  ;;  %450 = vmatpush.bf16.msrb.mxu3 %v675_v34 }
  0x16   :  { %v109_v21 = vadd.f32 %v693_v17, %v108_v20 }
  0x18   :  { %v111_v22 = vsel %vm110_vm5, %v693_v17, %v109_v21 }
  0x7a   :  { %v50_v7 = vpop.permute.xlu0 %49 }
  0x7b   :  { %vm54_vm2 = vcmp.eq.s32.totalorder %v847_v6, %v50_v7 }
  0x7c   :  { %v640_v9 = vsel %vm54_vm2, 1.0, %v786_v8 }
  0x7d   :  { %643 = vmatmul.msk.f32.vlgmr.msra.gmra.mxu0 %vm62_vm1, %v640_v9 }
  0x7e   :  { %498 = vmatpush.bf16.msra.mxu0 %v676_v33 }
  0x82   :  { %v53_v10 = vpop.permute.xlu0 %52  ;;  %499 = vmatpush.bf16.msra.mxu0 %v675_v34 }
  0x83   :  { %vm55_vm3 = vcmp.eq.s32.totalorder %v847_v6, %v53_v10  ;;  %v677_v10 = vld [vmem:[%s967_s6] sm:$0xff] }
  0x84   :  { %v641_v11 = vsel %vm55_vm3, 1.0, %v786_v8 }
  0x85   :  { %644 = vmatmul.msk.f32.gmra.mxu0 %vm62_vm1, %v641_v11 }
  0x95   :  { %v216_v1 = vpop.f32.mrf.mxu2 }
  0x9d   :  { %v218_v2 = vpop.f32.mrf.mxu2 }
  0xfa   :  { %v90_v12 = vpop.f32.mrf.mxu0 }
  0xfb   :  { %v99_v13 = vsel %vm98_vm4, %v90_v12, 0.0 }
  0xfc   :  { %100 = vadd.xlane.f32.xlu1 %v99_v13 }
 0x102   :  { %v93_v14 = vpop.f32.mrf.mxu0 }
 0x103   :  { %v102_v15 = vsel %vm98_vm4, %v93_v14, 0.0 }
 0x104   :  { %103 = vadd.xlane.f32.xlu1 %v102_v15 }
 0x16f   :  { %v101_v23 = vpop.xlane.xlu1 %100 }
 0x170   :  { %v112_v24 = vmul.f32 %v111_v22, %v101_v23 }
 0x172   :  { %v114_v25 = vsub.f32 %v90_v12, %v112_v24 }
 0x174   :  { %v116_v26 = vmul.f32 %v114_v25, %v114_v25 }
 0x176   :  { %v118_v27 = vsel %vm98_vm4, %v116_v26, 0.0 }
 0x177   :  { %119 = vadd.xlane.f32.xlu2 %v118_v27  ;;  %v104_v28 = vpop.xlane.xlu1 %103 }
 0x178   :  { %v113_v29 = vmul.f32 %v111_v22, %v104_v28 }
 0x17a   :  { %v115_v30 = vsub.f32 %v93_v14, %v113_v29 }
 0x17c   :  { %v117_v31 = vmul.f32 %v115_v30, %v115_v30 }
 0x17e   :  { %v121_v32 = vsel %vm98_vm4, %v117_v31, 0.0 }
 0x17f   :  { %122 = vadd.xlane.f32.xlu2 %v121_v32 }
 0x1ea   :  { %v120_v36 = vpop.xlane.xlu2 %119 }
 0x1eb   :  { %v124_v37 = vmul.f32 %v120_v36, %v111_v22 }
 0x1ed   :  { %v126_v38 = vadd.f32 1e-05, %v124_v37 }
 0x1ef   :  { %694 = vrsqrt.f32 %v126_v38  ;;  %vm134_vm7 = vweird.f32 %v126_v38 }
 0x1f2   :  { %v123_v39 = vpop.xlane.xlu2 %122 }
 0x1f3   :  { %v125_v40 = vmul.f32 %v123_v39, %v111_v22 }
 0x1f5   :  { %v695_v41 = vpop.eup %694  ;;  %v127_v42 = vadd.f32 1e-05, %v125_v40 }
 0x1f6   :  { %v129_v43 = vmul.f32 %v695_v41, %v126_v38  ;;  %vm135_vm6 = vweird.f32 %v695_v41 }
 0x1f7   :  { %696 = vrsqrt.f32 %v127_v42  ;;  %vm136_vm8 = vmor %vm134_vm7, %vm135_vm6  ;;  %vm144_vm10 = vweird.f32 %v127_v42 }
 0x1f8   :  { %v130_v44 = vmul.f32 %v695_v41, %v129_v43 }
 0x1fa   :  { %v131_v45 = vmul.f32 0.5, %v130_v44 }
 0x1fc   :  { %v132_v46 = vsub.f32 1.5, %v131_v45 }
 0x1fd   :  { %v697_v47 = vpop.eup %696 }
 0x1fe   :  { %v133_v48 = vmul.f32 %v695_v41, %v132_v46  ;;  %v139_v49 = vmul.f32 %v697_v47, %v127_v42  ;;  %vm145_vm9 = vweird.f32 %v697_v47 }
 0x1ff   :  { %vm146_vm11 = vmor %vm144_vm10, %vm145_vm9 }
 0x200   :  { %v140_v50 = vmul.f32 %v697_v47, %v139_v49  ;;  %v137_v51 = vsel %vm136_vm8, %v695_v41, %v133_v48 }
 0x201   :  { %v148_v54 = vmul.f32 %v137_v51, %v114_v25 }
 0x202   :  { %v141_v52 = vmul.f32 0.5, %v140_v50 }
 0x203   :  { %v151_v59 = vmul.f32 %v688_v55, %v148_v54 }
 0x204   :  { %v142_v53 = vsub.f32 1.5, %v141_v52 }
 0x205   :  { %v154_v62 = vadd.f32 %v689_v60, %v151_v59 }
 0x206   :  { %v143_v56 = vmul.f32 %v697_v47, %v142_v53 }
 0x208   :  { %v147_v57 = vsel %vm146_vm11, %v697_v47, %v143_v56 }
 0x209   :  { %v149_v58 = vmul.f32 %v147_v57, %v115_v30 }
 0x20b   :  { %v152_v61 = vmul.f32 %v688_v55, %v149_v58 }
 0x20d   :  { %v155_v63 = vadd.f32 %v689_v60, %v152_v61 }
 0x20f   :  { %v156_v0 = vpack.c.bf16 %v155_v63, %v154_v62 }
 0x211   :  { %649 = vmatmul.msk.bf16.vlgmr.msra.gmra.mxu1 %vm98_vm4, %v156_v0 }
 0x212   :  { %547 = vmatpush.bf16.msra.mxu1 %v676_v33 }
 0x216   :  { %548 = vmatpush.bf16.msra.mxu1 %v675_v34 }
 0x28e   :  { %v179_v4 = vpop.f32.mrf.mxu1 }
 0x28f   :  { %v874_v5 = vadd.f32 %v871_v3, %v179_v4 }
 0x291   :  { %v220_v7 = vadd.f32 %v216_v1, %v874_v5 }
 0x293   :  { %698 = vtanh.f32 %v220_v7 }
 0x296   :  { %v181_v62 = vpop.f32.mrf.mxu1 }
 0x299   :  { %v699_v8 = vpop.eup %698 }
 0x29a   :  { %v222_v9 = vmul.f32 0.5, %v699_v8 }
 0x29c   :  { %v223_v11 = vadd.f32 0.5, %v222_v9 }
 0x29e   :  { %v226_v12 = vsel %vm879_vm14, %v699_v8, %v223_v11 }
 0x29f   :  { %229 = vrot.lane.b32.xlu0 %v226_v12, %s783_s29  ;;  %v227_v15 = vmul.f32 0.0, %v226_v12 }
 0x311   :  { %v230_v13 = vpop.permute.xlu0 %229 }
 0x312   :  { %v232_v14 = vmul.f32 %v230_v13, %v226_v12 }
 0x314   :  { %234 = vrot.lane.b32.xlu1 %v232_v14, %s788_s2 }
 0x386   :  { %v235_v16 = vpop.permute.xlu1 %234 }
 0x387   :  { %v237_v6 = vadd.f32 %v235_v16, %v227_v15 }
 0x389   :  { %700 = vtanh.f32 %v237_v6  ;;  %v273_v32 = vrot.slane %v237_v6, 6 }
 0x38f   :  { %v701_v17 = vpop.eup %700 }
 0x390   :  { %240 = vrot.lane.b32.xlu2 %v701_v17, %s783_s29 }
 0x3ea   :  { %v241_v18 = vpop.permute.xlu2 %240 }
 0x3eb   :  { %v243_v19 = vmul.f32 %v241_v18, %v226_v12 }
 0x3ed   :  { %v244_v20 = vpack.c.bf16 %v243_v19, %v243_v19 }
 0x3ef   :  { %246 = vrot.lane.b32.xlu0 %v244_v20, %s788_s2 }
 0x461   :  { %v247_v21 = vpop.permute.xlu0 %246 }
 0x462   :  { %658 = vmatmul.msk.bf16.vlgmr.msra.gmra.mxu3 %vm203_vm15, %v247_v21  ;;  %v915_v21 = vadd.f32 %v871_v3, %v181_v62 }
 0x4e5   :  { %v260_v22 = vpop.f32.mrf.mxu3 }
 0x4e6   :  { %v265_v23 = vrot.slane %v260_v22, 6 }
 0x4e8   :  { %v267_v24 = vadd.f32 %v265_v23, %v874_v5 }
 0x4ea   :  { %702 = vtanh.f32 %v267_v24 }
 0x4ed   :  { %v262_v25 = vpop.f32.mrf.mxu3 }
 0x4f0   :  { %v703_v26 = vpop.eup %702 }
 0x4f1   :  { %v269_v27 = vmul.f32 0.5, %v703_v26 }
 0x4f3   :  { %v270_v28 = vadd.f32 0.5, %v269_v27 }
 0x4f5   :  { %v271_v29 = vsel %vm879_vm14, %v703_v26, %v270_v28 }
 0x4f6   :  { %277 = vrot.lane.b32.xlu0 %v271_v29, %s783_s29  ;;  %v275_v33 = vmul.f32 %v273_v32, %v271_v29 }
 0x568   :  { %v278_v30 = vpop.permute.xlu0 %277 }
 0x569   :  { %v280_v31 = vmul.f32 %v278_v30, %v271_v29 }
 0x56b   :  { %282 = vrot.lane.b32.xlu0 %v280_v31, %s788_s2 }
 0x5dd   :  { %v283_v34 = vpop.permute.xlu0 %282 }
 0x5de   :  { %v285_v35 = vadd.f32 %v283_v34, %v275_v33 }
 0x5e0   :  { %704 = vtanh.f32 %v285_v35  ;;  %v322_v52 = vrot.slane %v285_v35, 6 }
 0x5e6   :  { %v705_v36 = vpop.eup %704 }
 0x5e7   :  { %288 = vrot.lane.b32.xlu2 %v705_v36, %s783_s29 }
 0x641   :  { %v289_v37 = vpop.permute.xlu2 %288 }
 0x642   :  { %v291_v38 = vmul.f32 %v289_v37, %v271_v29 }
 0x644   :  { %v292_v39 = vpack.c.bf16 %v291_v38, %v291_v38 }
 0x646   :  { %v294_v40 = vrot.slane %v292_v39, 1 }
 0x648   :  { %295 = vrot.lane.b32.xlu1 %v294_v40, %s788_s2 }
 0x6ba   :  { %v296_v41 = vpop.permute.xlu1 %295 }
 0x6bb   :  { %659 = vmatmul.msk.bf16.vlgmr.msrb.gmra.mxu0 %vm203_vm15, %v296_v41 }
 0x738   :  { %v309_v42 = vpop.f32.mrf.mxu0 }
 0x739   :  { %v314_v43 = vrot.slane %v309_v42, 4 }
 0x73b   :  { %v316_v44 = vadd.f32 %v314_v43, %v874_v5 }
 0x73d   :  { %706 = vtanh.f32 %v316_v44 }
 0x740   :  { %v311_v45 = vpop.f32.mrf.mxu0 }
 0x743   :  { %v707_v46 = vpop.eup %706 }
 0x744   :  { %v318_v47 = vmul.f32 0.5, %v707_v46 }
 0x746   :  { %v319_v48 = vadd.f32 0.5, %v318_v47 }
 0x748   :  { %v320_v49 = vsel %vm879_vm14, %v707_v46, %v319_v48 }
 0x749   :  { %326 = vrot.lane.b32.xlu0 %v320_v49, %s783_s29  ;;  %v324_v53 = vmul.f32 %v322_v52, %v320_v49 }
 0x7bb   :  { %v327_v50 = vpop.permute.xlu0 %326 }
 0x7bc   :  { %v329_v51 = vmul.f32 %v327_v50, %v320_v49 }
 0x7be   :  { %331 = vrot.lane.b32.xlu2 %v329_v51, %s788_s2 }
 0x818   :  { %v332_v54 = vpop.permute.xlu2 %331 }
 0x819   :  { %v334_v55 = vadd.f32 %v332_v54, %v324_v53 }
 0x81b   :  { %708 = vtanh.f32 %v334_v55  ;;  %v371_v13 = vrot.slane %v334_v55, 6 }
 0x821   :  { %v709_v56 = vpop.eup %708 }
 0x822   :  { %337 = vrot.lane.b32.xlu1 %v709_v56, %s783_s29 }
 0x894   :  { %v338_v57 = vpop.permute.xlu1 %337 }
 0x895   :  { %v340_v58 = vmul.f32 %v338_v57, %v320_v49 }
 0x897   :  { %v341_v59 = vpack.c.bf16 %v340_v58, %v340_v58 }
 0x899   :  { %v343_v60 = vrot.slane %v341_v59, 2 }
 0x89b   :  { %344 = vrot.lane.b32.xlu0 %v343_v60, %s788_s2 }
 0x90d   :  { %v345_v61 = vpop.permute.xlu0 %344 }
 0x90e   :  { %660 = vmatmul.msk.bf16.vlgmr.msrb.gmra.mxu1 %vm203_vm15, %v345_v61 }
 0x98b   :  { %v358_v63 = vpop.f32.mrf.mxu1 }
 0x98c   :  { %v363_v0 = vrot.slane %v358_v63, 2 }
 0x98e   :  { %v365_v1 = vadd.f32 %v363_v0, %v874_v5 }
 0x990   :  { %710 = vtanh.f32 %v365_v1 }
 0x993   :  { %v360_v2 = vpop.f32.mrf.mxu1 }
 0x996   :  { %v711_v4 = vpop.eup %710 }
 0x997   :  { %v367_v7 = vmul.f32 0.5, %v711_v4 }
 0x999   :  { %v368_v8 = vadd.f32 0.5, %v367_v7 }
 0x99b   :  { %v369_v9 = vsel %vm879_vm14, %v711_v4, %v368_v8 }
 0x99c   :  { %375 = vrot.lane.b32.xlu2 %v369_v9, %s783_s29  ;;  %v373_v14 = vmul.f32 %v371_v13, %v369_v9 }
 0x9f6   :  { %v376_v11 = vpop.permute.xlu2 %375 }
 0x9f7   :  { %v378_v12 = vmul.f32 %v376_v11, %v369_v9 }
 0x9f9   :  { %380 = vrot.lane.b32.xlu1 %v378_v12, %s788_s2 }
 0xa6b   :  { %v381_v15 = vpop.permute.xlu1 %380 }
 0xa6c   :  { %v383_v16 = vadd.f32 %v381_v15, %v373_v14 }
 0xa6e   :  { %712 = vtanh.f32 %v383_v16  ;;  %v417_v31 = vrot.slane %v383_v16, 6 }
 0xa74   :  { %v713_v5 = vpop.eup %712 }
 0xa75   :  { %386 = vrot.lane.b32.xlu0 %v713_v5, %s783_s29 }
 0xae7   :  { %v387_v6 = vpop.permute.xlu0 %386 }
 0xae8   :  { %v389_v17 = vmul.f32 %v387_v6, %v369_v9 }
 0xaea   :  { %v390_v18 = vpack.c.bf16 %v389_v17, %v389_v17 }
 0xaec   :  { %v392_v19 = vrot.slane %v390_v18, 3 }
 0xaee   :  { %393 = vrot.lane.b32.xlu2 %v392_v19, %s788_s2 }
 0xb48   :  { %v394_v20 = vpop.permute.xlu2 %393 }
 0xb49   :  { %661 = vmatmul.msk.bf16.vlgmr.msrb.gmra.mxu2 %vm203_vm15, %v394_v20 }
 0xbcc   :  { %v407_v22 = vpop.f32.mrf.mxu2 }
 0xbcd   :  { %v411_v23 = vadd.f32 %v407_v22, %v915_v21 }
 0xbcf   :  { %714 = vtanh.f32 %v411_v23 }
 0xbd4   :  { %v409_v24 = vpop.f32.mrf.mxu2 }
 0xbd5   :  { %v715_v25 = vpop.eup %714 }
 0xbd6   :  { %v413_v26 = vmul.f32 0.5, %v715_v25 }
 0xbd8   :  { %v414_v27 = vadd.f32 0.5, %v413_v26 }
 0xbda   :  { %v415_v28 = vsel %vm879_vm14, %v715_v25, %v414_v27 }
 0xbdb   :  { %421 = vrot.lane.b32.xlu1 %v415_v28, %s783_s29  ;;  %v419_v3 = vmul.f32 %v417_v31, %v415_v28 }
 0xc4d   :  { %v422_v29 = vpop.permute.xlu1 %421 }
 0xc4e   :  { %v424_v30 = vmul.f32 %v422_v29, %v415_v28 }
 0xc50   :  { %426 = vrot.lane.b32.xlu0 %v424_v30, %s788_s2 }
 0xcc2   :  { %v427_v32 = vpop.permute.xlu0 %426 }
 0xcc3   :  { %v429_v33 = vadd.f32 %v427_v32, %v419_v3  ;;  %v678_v3 = vld [vmem:[%s967_s6 + $0x8] sm:$0xff]  ;;  %s630_s6 = sshll.u32 %s968_s7, 4  ;;  %s631_s6 = int_to_ptr.hbm [resolvable:$true] %s630_s6 }
 0xcc4   :  { %614 = vmatpush.bf16.msra.mxu2 %v678_v3 }
 0xcc5   :  { %716 = vtanh.f32 %v429_v33  ;;  %v465_v49 = vrot.slane %v429_v33, 6 }
 0xcc8   :  { %615 = vmatpush.bf16.msra.mxu2 %v677_v10 }
 0xccb   :  { %v717_v34 = vpop.eup %716 }
 0xccc   :  { %432 = vrot.lane.b32.xlu2 %v717_v34, %s783_s29 }
 0xd26   :  { %v433_v35 = vpop.permute.xlu2 %432 }
 0xd27   :  { %v435_v36 = vmul.f32 %v433_v35, %v415_v28 }
 0xd29   :  { %v436_v37 = vpack.c.bf16 %v435_v36, %v435_v36 }
 0xd2b   :  { %438 = vrot.lane.b32.xlu1 %v436_v37, %s788_s2  ;;  %v691_v37 = vld [vmem:[%s966_s5 + $0x1] ss:$0 sm:$0xff] }
 0xd9d   :  { %v439_v38 = vpop.permute.xlu1 %438 }
 0xd9e   :  { %662 = vmatmul.msk.bf16.vlgmr.msrb.gmra.mxu3 %vm203_vm15, %v439_v38 }
 0xe21   :  { %v452_v39 = vpop.f32.mrf.mxu3 }
 0xe22   :  { %v457_v40 = vrot.slane %v452_v39, 6 }
 0xe24   :  { %v459_v41 = vadd.f32 %v457_v40, %v915_v21 }
 0xe26   :  { %718 = vtanh.f32 %v459_v41 }
 0xe29   :  { %v454_v42 = vpop.f32.mrf.mxu3 }
 0xe2c   :  { %v719_v43 = vpop.eup %718 }
 0xe2d   :  { %v461_v44 = vmul.f32 0.5, %v719_v43 }
 0xe2f   :  { %v462_v45 = vadd.f32 0.5, %v461_v44 }
 0xe31   :  { %v463_v46 = vsel %vm879_vm14, %v719_v43, %v462_v45 }
 0xe32   :  { %469 = vrot.lane.b32.xlu0 %v463_v46, %s783_s29  ;;  %v467_v50 = vmul.f32 %v465_v49, %v463_v46 }
 0xea4   :  { %v470_v47 = vpop.permute.xlu0 %469 }
 0xea5   :  { %v472_v48 = vmul.f32 %v470_v47, %v463_v46 }
 0xea7   :  { %474 = vrot.lane.b32.xlu2 %v472_v48, %s788_s2 }
 0xf01   :  { %v475_v51 = vpop.permute.xlu2 %474 }
 0xf02   :  { %v477_v52 = vadd.f32 %v475_v51, %v467_v50 }
 0xf04   :  { %720 = vtanh.f32 %v477_v52  ;;  %v514_v8 = vrot.slane %v477_v52, 6 }
 0xf0a   :  { %v721_v53 = vpop.eup %720 }
 0xf0b   :  { %480 = vrot.lane.b32.xlu1 %v721_v53, %s783_s29 }
 0xf7d   :  { %v481_v54 = vpop.permute.xlu1 %480 }
 0xf7e   :  { %v483_v55 = vmul.f32 %v481_v54, %v463_v46 }
 0xf80   :  { %v484_v56 = vpack.c.bf16 %v483_v55, %v483_v55 }
 0xf82   :  { %v486_v57 = vrot.slane %v484_v56, 1 }
 0xf84   :  { %487 = vrot.lane.b32.xlu0 %v486_v57, %s788_s2 }
 0xff6   :  { %v488_v58 = vpop.permute.xlu0 %487 }
 0xff7   :  { %663 = vmatmul.msk.bf16.vlgmr.msra.gmra.mxu0 %vm203_vm15, %v488_v58 }
0x1074   :  { %v501_v59 = vpop.f32.mrf.mxu0 }
0x1075   :  { %v506_v60 = vrot.slane %v501_v59, 4 }
0x1077   :  { %v508_v61 = vadd.f32 %v506_v60, %v915_v21 }
0x1079   :  { %722 = vtanh.f32 %v508_v61 }
0x107c   :  { %v503_v62 = vpop.f32.mrf.mxu0 }
0x107f   :  { %v723_v63 = vpop.eup %722 }
0x1080   :  { %v510_v0 = vmul.f32 0.5, %v723_v63 }
0x1082   :  { %v511_v1 = vadd.f32 0.5, %v510_v0 }
0x1084   :  { %v512_v2 = vsel %vm879_vm14, %v723_v63, %v511_v1 }
0x1085   :  { %518 = vrot.lane.b32.xlu2 %v512_v2, %s783_s29  ;;  %v516_v9 = vmul.f32 %v514_v8, %v512_v2 }
0x10df   :  { %v519_v4 = vpop.permute.xlu2 %518 }
0x10e0   :  { %v521_v7 = vmul.f32 %v519_v4, %v512_v2 }
0x10e2   :  { %523 = vrot.lane.b32.xlu1 %v521_v7, %s788_s2 }
0x1154   :  { %v524_v11 = vpop.permute.xlu1 %523 }
0x1155   :  { %v526_v12 = vadd.f32 %v524_v11, %v516_v9 }
0x1157   :  { %724 = vtanh.f32 %v526_v12  ;;  %v563_v28 = vrot.slane %v526_v12, 6 }
0x115d   :  { %v725_v13 = vpop.eup %724 }
0x115e   :  { %529 = vrot.lane.b32.xlu0 %v725_v13, %s783_s29 }
0x11d0   :  { %v530_v14 = vpop.permute.xlu0 %529 }
0x11d1   :  { %v532_v15 = vmul.f32 %v530_v14, %v512_v2 }
0x11d3   :  { %v533_v16 = vpack.c.bf16 %v532_v15, %v532_v15 }
0x11d5   :  { %v535_v5 = vrot.slane %v533_v16, 2 }
0x11d7   :  { %536 = vrot.lane.b32.xlu2 %v535_v5, %s788_s2 }
0x1231   :  { %v537_v6 = vpop.permute.xlu2 %536 }
0x1232   :  { %664 = vmatmul.msk.bf16.vlgmr.msra.gmra.mxu1 %vm203_vm15, %v537_v6 }
0x12af   :  { %v550_v17 = vpop.f32.mrf.mxu1 }
0x12b0   :  { %v555_v18 = vrot.slane %v550_v17, 2 }
0x12b2   :  { %v557_v19 = vadd.f32 %v555_v18, %v915_v21 }
0x12b4   :  { %726 = vtanh.f32 %v557_v19 }
0x12b7   :  { %v552_v20 = vpop.f32.mrf.mxu1 }
0x12ba   :  { %v727_v22 = vpop.eup %726 }
0x12bb   :  { %v559_v23 = vmul.f32 0.5, %v727_v22 }
0x12bd   :  { %v560_v24 = vadd.f32 0.5, %v559_v23 }
0x12bf   :  { %v561_v25 = vsel %vm879_vm14, %v727_v22, %v560_v24 }
0x12c0   :  { %567 = vrot.lane.b32.xlu1 %v561_v25, %s783_s29  ;;  %v565_v29 = vmul.f32 %v563_v28, %v561_v25 }
0x1332   :  { %v568_v26 = vpop.permute.xlu1 %567 }
0x1333   :  { %v570_v27 = vmul.f32 %v568_v26, %v561_v25 }
0x1335   :  { %572 = vrot.lane.b32.xlu0 %v570_v27, %s788_s2 }
0x13a7   :  { %v573_v30 = vpop.permute.xlu0 %572 }
0x13a8   :  { %v575_v31 = vadd.f32 %v573_v30, %v565_v29 }
0x13aa   :  { %728 = vtanh.f32 %v575_v31 }
0x13b0   :  { %v729_v21 = vpop.eup %728 }
0x13b1   :  { %578 = vrot.lane.b32.xlu2 %v729_v21, %s783_s29  ;;  %s628_s29 = sshll.u32 %s789_s28, 4  ;;  %s629_s29 = int_to_ptr.vmem [resolvable:$true] %s628_s29 }
0x140b   :  { %v579_v32 = vpop.permute.xlu2 %578 }
0x140c   :  { %v581_v33 = vmul.f32 %v579_v32, %v561_v25 }
0x140e   :  { %v582_v34 = vpack.c.bf16 %v581_v33, %v581_v33 }
0x1410   :  { %v590_v35 = vrot.slane %v582_v34, 3 }
0x1412   :  { %591 = vrot.lane.b32.xlu1 %v590_v35, %s788_s2 }
0x1484   :  { %v592_v36 = vpop.permute.xlu1 %591 }
0x1485   :  { %673 = vmatmul.msk.bf16.vlgmr.msra.gmra.mxu2 %vm203_vm15, %v592_v36 }
0x1508   :  { %v617_v38 = vpop.f32.mrf.mxu2 }
0x1509   :  { %v618_v39 = vadd.f32 %v691_v37, %v617_v38 }
0x150b   :  { %622 = vst.msk [vmem:[#allocation5] sm:$0x3] %vm621_vm0, %v618_v39 }
0x150c   :  { %633 = dma.vmem_to_hbm [thread:$0]  %s629_s29, 32, %s631_s6, [#allocation4]  }
0x1510   :  { %v619_v40 = vpop.f32.mrf.mxu2 }
0x1511   :  { %780 = dma.done.wait [#allocation4], 32  }
0x1512   :  { %781 = vsyncadd [#allocation4], 4294967264 }
0x1513   :  { %638 = vsyncpa [#allocation3], 1 }
0x1514   :  { %639 = vsyncpa [#allocation4], 1 }

</bundles_post_ra>
